<compile_context>
chip_gen: v6e
topology: v6e:2x2x1
jax: 0.10.0
libtpu: 0.0.40
codegen_flags: <defaults>
</compile_context>

<pallas_src>
import jax
import jax.numpy as jnp
from jax.experimental import pallas as pl
from jax.experimental.pallas import tpu as pltpu
from typing import NamedTuple


# --------------------------------------------------------------------------
# Small helpers
# --------------------------------------------------------------------------
def _round_up(x: int, m: int) -> int:
    return ((x + m - 1) // m) * m


def _cdiv(a: int, b: int) -> int:
    return -(-a // b)


def _sublane_for(dtype) -> int:
    # Minimum sublane tile per dtype: 8 (f32), 16 (bf16), 32 (int8/fp8).
    return 32 // jnp.dtype(dtype).itemsize


def _vmem_capacity_bytes() -> int:
    try:
        return int(pltpu.get_tpu_info().vmem_capacity_bytes)
    except Exception:
        return 64 << 20  # conservative (v7x-sized) fallback


def _divisor_tile_leq(total: int, cap: int) -> int:
    """Largest multiple-of-128 divisor of `total` (itself a multiple of 128)
    that is <= cap (clamped below at 128)."""
    n = total // 128
    best = 1
    for d in range(1, n + 1):
        if n % d == 0 and d * 128 <= cap:
            best = d
    return best * 128


def _plan_nk(n_pad, k_pad, w_isz, budget, tn_max, tk_max, tm_plan=256):
    """Pick (tn, tk): prefer full N / full K (single N block, single K step),
    shrink (largest first) until the estimated VMEM usage fits the budget."""
    tn = _divisor_tile_leq(n_pad, min(tn_max, n_pad))
    tk = _divisor_tile_leq(k_pad, min(tk_max, k_pad))

    def usage(tn_, tk_):
        ksteps = k_pad // tk_
        u = (2 * tm_plan * tk_ * w_isz          # double-buffered x tiles
             + 2 * tk_ * 2 * tn_ * w_isz        # double-buffered fused-W tiles
             + 2 * 2 * tn_ * w_isz              # fused-bias tiles
             + 2 * tm_plan * tn_ * w_isz)       # double-buffered output tiles
        if ksteps > 1:
            u += tm_plan * 2 * tn_ * 4          # f32 accumulator scratch
        return u

    while usage(tn, tk) > budget and (tn > 128 or tk > 128):
        if tk >= tn and tk > 128:
            tk = _divisor_tile_leq(k_pad, tk - 128)
        else:
            tn = _divisor_tile_leq(n_pad, tn - 128)
    return tn, tk


def _plan_tm(M, sublane, tn, tk, ksteps, x_isz, w_isz, out_isz, budget,
             tm_max, min_m_blocks):
    """Balanced tm for ragged M: tm = round_up(ceil(M / m_blocks), sublane)."""
    def usage(tm):
        u = (2 * tm * tk * x_isz
             + 2 * tk * 2 * tn * w_isz
             + 2 * 2 * tn * w_isz
             + 2 * tm * tn * out_isz)
        if ksteps > 1:
            u += tm * 2 * tn * 4
        return u

    tm_cap = max(sublane, (tm_max // sublane) * sublane)
    m_blocks = max(min_m_blocks, _cdiv(M, tm_cap))
    m_blocks = max(1, min(m_blocks, _cdiv(M, sublane)))
    tm = _round_up(_cdiv(M, m_blocks), sublane)
    while usage(tm) > budget and tm > sublane:
        m_blocks += 1
        tm = _round_up(_cdiv(M, m_blocks), sublane)
    return tm


# --------------------------------------------------------------------------
# Kernels
# --------------------------------------------------------------------------
def _finalize(beta_ref, bias_ref, acc, o_ref):
    tn = o_ref.shape[1]
    acc = acc + bias_ref[...].astype(jnp.float32)
    gate = acc[:, :tn]
    lin = acc[:, tn:]
    beta = beta_ref[0, 0]
    swish_gate = gate * jax.nn.sigmoid(beta * gate)   # exp lowers to EUP
    o_ref[...] = (swish_gate * lin).astype(o_ref.dtype)


def _swiglu_kernel_single_k(beta_ref, x_ref, w_ref, bias_ref, o_ref):
    # Single K step: no accumulator scratch, no per-step read-modify-write.
    acc = jnp.dot(x_ref[...], w_ref[...], preferred_element_type=jnp.float32)
    _finalize(beta_ref, bias_ref, acc, o_ref)


def _swiglu_kernel_multi_k(beta_ref, x_ref, w_ref, bias_ref, o_ref, acc_ref):
    k = pl.program_id(2)

    @pl.when(k == 0)
    def _():
        acc_ref[...] = jnp.zeros_like(acc_ref)

    acc_ref[...] += jnp.dot(x_ref[...], w_ref[...],
                            preferred_element_type=jnp.float32)

    @pl.when(k == pl.num_programs(2) - 1)
    def _():
        _finalize(beta_ref, bias_ref, acc_ref[...], o_ref)


# --------------------------------------------------------------------------
# Parameter preparation (hoisted out of the per-call path)
# --------------------------------------------------------------------------
class SwiGLUParams(NamedTuple):
    w_fused: jnp.ndarray     # [K_pad, 2*N_pad]  (gate|lin interleaved per N block)
    bias_fused: jnp.ndarray  # [1, 2*N_pad]
    beta: jnp.ndarray        # [1, 1] f32 (SMEM scalar)
    d: int
    n_pad: int
    k_pad: int
    tn: int
    tk: int
    vmem_budget: int
    vmem_limit: int


def prepare_swiglu_params(wg, bg, w, b, beta, *, tn_max=1024, tk_max=2048):
    """Fuse/transpose/pad the two Linear layers ONCE.  wg/w are torch-layout
    [out_features, in_features] square weights; bg/b are [D] biases."""
    D = wg.shape[1]
    n_pad = _round_up(D, 128)
    k_pad = _round_up(D, 128)

    cap = _vmem_capacity_bytes()
    budget = max(int(cap * 0.75), 24 << 20)          # per-generation planning budget
    vmem_limit = min(cap, budget + (8 << 20))

    w_isz = jnp.dtype(wg.dtype).itemsize
    tn, tk = _plan_nk(n_pad, k_pad, w_isz, budget, tn_max, tk_max)
    nt = n_pad // tn

    wg_t = jnp.pad(wg.T, ((0, k_pad - D), (0, n_pad - D)))
    w_t = jnp.pad(w.T, ((0, k_pad - D), (0, n_pad - D)))
    bg_p = jnp.pad(bg, (0, n_pad - D))
    b_p = jnp.pad(b, (0, n_pad - D))

    # Fused column layout for N block j: [gate cols j*tn:(j+1)*tn | lin cols ...]
    w_fused = jnp.stack(
        [wg_t.reshape(k_pad, nt, tn), w_t.reshape(k_pad, nt, tn)],
        axis=2).reshape(k_pad, 2 * n_pad)
    bias_fused = jnp.stack(
        [bg_p.reshape(nt, tn), b_p.reshape(nt, tn)],
        axis=1).reshape(1, 2 * n_pad)

    beta2 = jnp.asarray(beta, jnp.float32).reshape(1, 1)

    return SwiGLUParams(w_fused=w_fused, bias_fused=bias_fused, beta=beta2,
                        d=D, n_pad=n_pad, k_pad=k_pad, tn=tn, tk=tk,
                        vmem_budget=budget, vmem_limit=vmem_limit)


# --------------------------------------------------------------------------
# Forward pass
# --------------------------------------------------------------------------
def swiglu_apply(params: SwiGLUParams, x, *, tm_max=512):
    """x: [M, D].  Returns [M, D] in x.dtype."""
    M, D = x.shape
    assert D == params.d, "feature dim mismatch with prepared params"
    out_dtype = x.dtype

    tn, tk = params.tn, params.tk
    n_blocks = params.n_pad // tn
    k_steps = params.k_pad // tk

    sub = _sublane_for(x.dtype)
    # Keep both TensorCores busy on v7x when the parallel grid would be 1x1.
    min_m_blocks = 2 if (n_blocks == 1 and M >= 256) else 1
    tm = _plan_tm(M, sub, tn, tk, k_steps,
                  jnp.dtype(x.dtype).itemsize,
                  jnp.dtype(params.w_fused.dtype).itemsize,
                  jnp.dtype(out_dtype).itemsize,
                  params.vmem_budget, tm_max, min_m_blocks)
    m_blocks = _cdiv(M, tm)
    m_pad = m_blocks * tm

    x_p = jnp.pad(x, ((0, m_pad - M), (0, params.k_pad - D)))

    if k_steps == 1:
        kernel = _swiglu_kernel_single_k
        grid = (m_blocks, n_blocks)
        in_specs = [
            pl.BlockSpec(memory_space=pltpu.SMEM),                     # beta
            pl.BlockSpec((tm, tk), lambda i, j: (i, 0)),               # x
            pl.BlockSpec((tk, 2 * tn), lambda i, j: (0, j)),           # fused W
            pl.BlockSpec((1, 2 * tn), lambda i, j: (0, j)),            # fused bias
        ]
        out_specs = pl.BlockSpec((tm, tn), lambda i, j: (i, j))
        scratch = []
        dims = ("parallel", "parallel")
    else:
        kernel = _swiglu_kernel_multi_k
        grid = (m_blocks, n_blocks, k_steps)
        in_specs = [
            pl.BlockSpec(memory_space=pltpu.SMEM),                     # beta
            pl.BlockSpec((tm, tk), lambda i, j, k: (i, k)),            # x
            pl.BlockSpec((tk, 2 * tn), lambda i, j, k: (k, j)),        # fused W
            pl.BlockSpec((1, 2 * tn), lambda i, j, k: (0, j)),         # fused bias
        ]
        out_specs = pl.BlockSpec((tm, tn), lambda i, j, k: (i, j))
        scratch = [pltpu.VMEM((tm, 2 * tn), jnp.float32)]
        dims = ("parallel", "parallel", "arbitrary")

    out_p = pl.pallas_call(
        kernel,
        out_shape=jax.ShapeDtypeStruct((m_pad, params.n_pad), out_dtype),
        grid_spec=pltpu.PrefetchScalarGridSpec(
            num_scalar_prefetch=0,
            grid=grid,
            in_specs=in_specs,
            out_specs=out_specs,
            scratch_shapes=scratch,
        ),
        compiler_params=pltpu.CompilerParams(
            dimension_semantics=dims,
            vmem_limit_bytes=params.vmem_limit,
        ),
    )(params.beta, x_p, params.w_fused, params.bias_fused)

    return out_p[:M, :D]


def swiglu(x, params: SwiGLUParams, *, tm_max=512):
    """Convenience wrapper handling arbitrary leading dims (like nn.Linear)."""
    lead = x.shape[:-1]
    y = swiglu_apply(params, x.reshape(-1, x.shape[-1]), tm_max=tm_max)
    return y.reshape(*lead, x.shape[-1])


def swiglu_ref(x, wg, bg, w, b, beta):
    hp = jax.lax.Precision.HIGHEST
    g = jnp.dot(x, wg.T, precision=hp) + bg
    lin = jnp.dot(x, w.T, precision=hp) + b
    return (g * jax.nn.sigmoid(beta * g)) * lin


# --------------------------------------------------------------------------
# Demo / self-test
# --------------------------------------------------------------------------
if __name__ == "__main__":
    key = jax.random.PRNGKey(0)

    def make_params(k, size):
        k_wg, k_bg, k_w, k_b = jax.random.split(k, 4)
        bound = 1.0 / (size ** 0.5)  # torch nn.Linear default init scale
        wg = jax.random.uniform(k_wg, (size, size), jnp.float32, -bound, bound)
        bg = jax.random.uniform(k_bg, (size,), jnp.float32, -bound, bound)
        w = jax.random.uniform(k_w, (size, size), jnp.float32, -bound, bound)
        b = jax.random.uniform(k_b, (size,), jnp.float32, -bound, bound)
        return wg, bg, w, b

    beta = jnp.float32(1.0)  # nn.Parameter(torch.ones(1))
    k_p1, k_p2, k_x1, k_x2 = jax.random.split(key, 4)

    # Case 1: the module's small demo shape (batch=2, seq=8, size=32);
    # exercises the single-K-step fast path (no accumulator scratch).
    batch, seq, size = 2, 8, 32
    wg, bg, w, b = make_params(k_p1, size)
    params1 = prepare_swiglu_params(wg, bg, w, b, beta)   # hoisted weight fusion
    x3 = jax.random.normal(k_x1, (batch, seq, size), dtype=jnp.float32)
    out = jax.block_until_ready(swiglu(x3, params1))
    ref = swiglu_ref(x3.reshape(-1, size), wg, bg, w, b,
                     beta).reshape(batch, seq, size)
    assert jnp.allclose(out, ref, atol=1e-4, rtol=1e-4), "mismatch (small case)"

    # Case 2: ragged M (300) with D=384 -> balanced 2x152 M blocks,
    # single N block and single K step.
    M2, size2 = 300, 384
    wg2, bg2, w2, b2 = make_params(k_p2, size2)
    x2 = jax.random.normal(k_x2, (M2, size2), dtype=jnp.float32)
    params2 = prepare_swiglu_params(wg2, bg2, w2, b2, beta)
    out2 = jax.block_until_ready(swiglu(x2, params2))
    ref2 = swiglu_ref(x2, wg2, bg2, w2, b2, beta)
    assert jnp.allclose(out2, ref2, atol=1e-4, rtol=1e-4), "mismatch (ragged case)"

    # Case 3: force small tn/tk to exercise the multi-N / multi-K accumulator
    # path (3 N blocks x 3 K steps) on the same data.
    params3 = prepare_swiglu_params(wg2, bg2, w2, b2, beta,
                                    tn_max=128, tk_max=128)
    out3 = jax.block_until_ready(swiglu(x2, params3))
    assert jnp.allclose(out3, ref2, atol=1e-4, rtol=1e-4), "mismatch (multi-K case)"

    print("KERNEL_OK")
</pallas_src>

<mosaic_0001>
module attributes {stable_mosaic.version = 11 : i64} {
  func.func @_swiglu_kernel_single_k(%arg0: i32, %arg1: i32, %arg2: memref<1x1xf32, #tpu.memory_space<smem>>, %arg3: memref<16x128xf32, #tpu.memory_space<vmem>>, %arg4: memref<128x256xf32, #tpu.memory_space<vmem>>, %arg5: memref<1x256xf32, #tpu.memory_space<vmem>>, %arg6: memref<16x128xf32, #tpu.memory_space<vmem>>) attributes {dimension_semantics = [#tpu.dimension_semantics<parallel>, #tpu.dimension_semantics<parallel>], iteration_bounds = array<i64: 1, 1>, scalar_prefetch = 0 : i64, scratch_operands = 0 : i64, tpu.core_type = #tpu.core_type<tc>, window_params = [{transform_indices = @transform_0, window_bounds = array<i64: 1, 1>}, {transform_indices = @transform_1, window_bounds = array<i64: 16, 128>}, {transform_indices = @transform_2, window_bounds = array<i64: 128, 256>}, {transform_indices = @transform_3, window_bounds = array<i64: 1, 256>}, {transform_indices = @transform_4, window_bounds = array<i64: 16, 128>}]} {
    %c0 = arith.constant 0 : index
    %c0_0 = arith.constant 0 : index
    %0 = vector.load %arg3[%c0, %c0_0] : memref<16x128xf32, #tpu.memory_space<vmem>>, vector<16x128xf32>
    %c0_1 = arith.constant 0 : index
    %c0_2 = arith.constant 0 : index
    %1 = vector.load %arg4[%c0_1, %c0_2] : memref<128x256xf32, #tpu.memory_space<vmem>>, vector<128x256xf32>
    %cst = arith.constant dense<0.000000e+00> : vector<16x256xf32>
    %2 = tpu.matmul %0, %1, %cst {dimension_numbers = #tpu.dot_dimension_numbers<[1], [0], [0], [1], [0, 0, 1, 1], [], []>} : vector<16x128xf32>, vector<128x256xf32>, vector<16x256xf32> -> vector<16x256xf32>
    %c0_3 = arith.constant 0 : index
    %c0_4 = arith.constant 0 : index
    %3 = vector.load %arg5[%c0_3, %c0_4] : memref<1x256xf32, #tpu.memory_space<vmem>>, vector<1x256xf32>
    %4 = vector.broadcast %3 : vector<1x256xf32> to vector<16x256xf32>
    %5 = arith.addf %2, %4 : vector<16x256xf32>
    %6 = vector.extract_strided_slice %5 {offsets = [0, 0], sizes = [16, 128], strides = [1, 1]} : vector<16x256xf32> to vector<16x128xf32>
    %7 = vector.extract_strided_slice %5 {offsets = [0, 128], sizes = [16, 128], strides = [1, 1]} : vector<16x256xf32> to vector<16x128xf32>
    %c0_5 = arith.constant 0 : index
    %c0_6 = arith.constant 0 : index
    %8 = memref.load %arg2[%c0_5, %c0_6] : memref<1x1xf32, #tpu.memory_space<smem>>
    %9 = vector.broadcast %8 : f32 to vector<16x128xf32>
    %10 = arith.mulf %9, %6 : vector<16x128xf32>
    %11 = arith.negf %10 : vector<16x128xf32>
    %12 = math.exp %11 : vector<16x128xf32>
    %cst_7 = arith.constant 1.000000e+00 : f32
    %13 = vector.broadcast %cst_7 : f32 to vector<16x128xf32>
    %14 = arith.addf %13, %12 : vector<16x128xf32>
    %15 = arith.divf %13, %14 : vector<16x128xf32>
    %16 = arith.mulf %6, %15 : vector<16x128xf32>
    %17 = arith.mulf %16, %7 : vector<16x128xf32>
    %c0_8 = arith.constant 0 : index
    %c0_9 = arith.constant 0 : index
    %18 = vector.load %arg6[%c0_8, %c0_9] : memref<16x128xf32, #tpu.memory_space<vmem>>, vector<16x128xf32>
    tpu.vector_store %arg6[%c0_8, %c0_9], %17 {strides = array<i32>} : memref<16x128xf32, #tpu.memory_space<vmem>>, vector<16x128xf32>,
    return
  }
  func.func @transform_0(%arg0: i32, %arg1: i32) -> (i32, i32) {
    %c0_i32 = arith.constant 0 : i32
    %c0_i32_0 = arith.constant 0 : i32
    %c0_i32_1 = arith.constant 0 : i32
    return %c0_i32, %c0_i32_0 : i32, i32
  }
  func.func @transform_1(%arg0: i32, %arg1: i32) -> (i32, i32) {
    %c0_i32 = arith.constant 0 : i32
    %c0_i32_0 = arith.constant 0 : i32
    return %arg0, %c0_i32 : i32, i32
  }
  func.func @transform_2(%arg0: i32, %arg1: i32) -> (i32, i32) {
    %c0_i32 = arith.constant 0 : i32
    %c0_i32_0 = arith.constant 0 : i32
    return %c0_i32, %arg1 : i32, i32
  }
  func.func @transform_3(%arg0: i32, %arg1: i32) -> (i32, i32) {
    %c0_i32 = arith.constant 0 : i32
    %c0_i32_0 = arith.constant 0 : i32
    return %c0_i32, %arg1 : i32, i32
  }
  func.func @transform_4(%arg0: i32, %arg1: i32) -> (i32, i32) {
    %c0_i32 = arith.constant 0 : i32
    return %arg0, %arg1 : i32, i32
  }
}

</mosaic_0001>

<bundles_post_ra>
// kernel: tpu_custom_call.1
= control target key start
LH: loop header
LB: loop body
LE: loop exit
PB: predicated region body
PF: predicated region fallthrough
CT: control target
= control target key end

     0   :  { %10 = vsyncpa [#allocation4], 0  ;;  %s380_s0 = inlined_call_operand.<no memory space> [shape: f32[1,1], index: 0, kind: input, shape index: {}]   ;;  %s381_s1 = inlined_call_operand.hbm [shape: f32[16,128], index: 1, kind: input, shape index: {}]   ;;  %s382_s2 = inlined_call_operand.hbm [shape: f32[128,256], index: 2, kind: input, shape index: {}]   ;;  %s383_s3 = inlined_call_operand.vmem [shape: f32[1,256], index: 3, kind: input, shape index: {}]   ;;  %s384_s4 = inlined_call_operand.hbm [shape: f32[16,128], index: 4, kind: output, shape index: {}]  }
   0x1   :  { %11 = vsyncpa [#allocation7], 0 }
   0x2   :  { %12 = vsyncpa [#allocation5], 0  ;;  %s326_s15 = smov [#allocation3]  }
   0x3   :  { %s20_s16 = sshll.u32 %s326_s15, 4  ;;  %s21_s16 = int_to_ptr.vmem [resolvable:$true] %s20_s16 }
   0x4   :  { %s268_s17 = scalar_lea.vmem %s21_s16, 256  ;;  %p273_p1 = scmp.lt.s32.totalorder %s21_s16, %s21_s16 }
   0x5   :  { %p269_p0 = scmp.ne.s32.totalorder %s21_s16, %s268_s17  ;;  %p274_p2 = scmp.lt.s32.totalorder %s268_s17, %s268_s17 }
   0x7   :  { %p275_p3 = por %p274_p2, %p273_p1 }
   0x9   :  { %p276_p4 = pnand %p275_p3, %p269_p0 }
   0xb   :  { %279 = shalt.err (!%p276_p4)
}
   0xc   :  { %s327_s18 = smov 128   ;;  %s328_s19 = smov 8  }
   0xd   :  { %26 = dma.hbm_to_vmem [thread:$0]  %s381_s1, 256, %s21_s16, [#allocation4], %s327_s18, %s327_s18, %s328_s19  }
   0xe   :  { %s329_s22 = smov [#allocation6]  }
   0xf   :  { %s32_s23 = sshll.u32 %s329_s22, 4  ;;  %s33_s23 = int_to_ptr.vmem [resolvable:$true] %s32_s23 }
  0x10   :  { %s288_s24 = scalar_lea.vmem %s33_s23, 4096  ;;  %p293_p6 = scmp.lt.s32.totalorder %s33_s23, %s33_s23 }
  0x11   :  { %p289_p5 = scmp.ne.s32.totalorder %s33_s23, %s288_s24  ;;  %p294_p7 = scmp.lt.s32.totalorder %s288_s24, %s288_s24 }
  0x13   :  { %p295_p8 = por %p294_p7, %p293_p6 }
  0x15   :  { %p296_p9 = pnand %p295_p8, %p289_p5 }
  0x17   :  { %299 = shalt.err (!%p296_p9)
}
  0x18   :  { %s330_s25 = smov 256   ;;  %s331_s26 = smov 16  }
  0x19   :  { %38 = dma.hbm_to_vmem [thread:$0]  %s382_s2, 4096, %s33_s23, [#allocation7], %s330_s25, %s330_s25, %s331_s26  }
  0x1a   :  { %320 = dma.done.wait [#allocation4], 256  }
  0x1b   :  { %321 = vsyncadd [#allocation4], 4294967040 }
  0x1c   :  { %322 = dma.done.wait [#allocation7], 4096  }
  0x1d   :  { %323 = vsyncadd [#allocation7], 4294963200  ;;  %v332_v0 = vmov 0.0   ;;  %v80_v1 = vld [vmem:[#allocation6 + $0xf8] sm:$0xff]  ;;  %v79_v2 = vld [vmem:[#allocation6 + $0xf0] sm:$0xff]  ;;  %v83_v35 = vlaneseq  ;;  %v171_v41 = vstv %s380_s0  ;;  %s333_s0 = smov [#allocation8]  }
  0x1e   :  { %157 = vmatprep.mubr.f32.mxu0 %v332_v0  ;;  %163 = vmatprep.mubr.f32.mxu1 %v332_v0  ;;  %v78_v3 = vld [vmem:[#allocation6 + $0xe8] sm:$0xff]  ;;  %v77_v4 = vld [vmem:[#allocation6 + $0xe0] sm:$0xff]  ;;  %v76_v5 = vld [vmem:[#allocation6 + $0xd8] sm:$0xff] }
  0x1f   :  { %93 = vmatprep.subr.mxu0 %v80_v1  ;;  %212 = vmatprep.subr.mxu1 %v80_v1  ;;  %v75_v6 = vld [vmem:[#allocation6 + $0xd0] sm:$0xff]  ;;  %v74_v7 = vld [vmem:[#allocation6 + $0xc8] sm:$0xff]  ;;  %v73_v8 = vld [vmem:[#allocation6 + $0xc0] sm:$0xff]  ;;  %v84_v36 = vshrl.u32 %v83_v35, 7 }
  0x20   :  { %94 = vmatpush1.msra.mxu0 %v79_v2  ;;  %228 = vmatpush1.msra.mxu1 %v79_v2  ;;  %v72_v9 = vld [vmem:[#allocation6 + $0xb8] sm:$0xff]  ;;  %v71_v10 = vld [vmem:[#allocation6 + $0xb0] sm:$0xff]  ;;  %v70_v11 = vld [vmem:[#allocation6 + $0xa8] sm:$0xff] }
  0x21   :  { %95 = vmatprep.subr.mxu0 %v78_v3  ;;  %213 = vmatprep.subr.mxu1 %v78_v3  ;;  %v69_v12 = vld [vmem:[#allocation6 + $0xa0] sm:$0xff]  ;;  %v68_v13 = vld [vmem:[#allocation6 + $0x98] sm:$0xff]  ;;  %v67_v14 = vld [vmem:[#allocation6 + $0x90] sm:$0xff]  ;;  %v85_v37 = vsub.s32 0, %v84_v36  ;;  %v89_v53 = vsub.s32 1, %v84_v36 }
  0x22   :  { %96 = vmatpush1.msra.mxu0 %v77_v4  ;;  %229 = vmatpush1.msra.mxu1 %v77_v4  ;;  %v66_v15 = vld [vmem:[#allocation6 + $0x88] sm:$0xff]  ;;  %v65_v16 = vld [vmem:[#allocation6 + $0x80] sm:$0xff]  ;;  %v64_v17 = vld [vmem:[#allocation6 + $0x78] sm:$0xff] }
  0x23   :  { %97 = vmatprep.subr.mxu0 %v76_v5  ;;  %214 = vmatprep.subr.mxu1 %v76_v5  ;;  %v63_v18 = vld [vmem:[#allocation6 + $0x70] sm:$0xff]  ;;  %v62_v19 = vld [vmem:[#allocation6 + $0x68] sm:$0xff]  ;;  %v61_v20 = vld [vmem:[#allocation6 + $0x60] sm:$0xff] }
  0x24   :  { %98 = vmatpush1.msra.mxu0 %v75_v6  ;;  %230 = vmatpush1.msra.mxu1 %v75_v6  ;;  %v60_v21 = vld [vmem:[#allocation6 + $0x58] sm:$0xff]  ;;  %v59_v22 = vld [vmem:[#allocation6 + $0x50] sm:$0xff]  ;;  %v58_v23 = vld [vmem:[#allocation6 + $0x48] sm:$0xff] }
  0x25   :  { %99 = vmatprep.subr.mxu0 %v74_v7  ;;  %215 = vmatprep.subr.mxu1 %v74_v7  ;;  %v57_v24 = vld [vmem:[#allocation6 + $0x40] sm:$0xff]  ;;  %v56_v25 = vld [vmem:[#allocation6 + $0x38] sm:$0xff]  ;;  %v55_v26 = vld [vmem:[#allocation6 + $0x30] sm:$0xff] }
  0x26   :  { %100 = vmatpush1.msra.mxu0 %v73_v8  ;;  %231 = vmatpush1.msra.mxu1 %v73_v8  ;;  %v54_v27 = vld [vmem:[#allocation6 + $0x28] sm:$0xff]  ;;  %v53_v28 = vld [vmem:[#allocation6 + $0x20] sm:$0xff]  ;;  %v52_v29 = vld [vmem:[#allocation6 + $0x18] sm:$0xff] }
  0x27   :  { %101 = vmatprep.subr.mxu0 %v72_v9  ;;  %216 = vmatprep.subr.mxu1 %v72_v9  ;;  %v51_v30 = vld [vmem:[#allocation6 + $0x10] sm:$0xff]  ;;  %v50_v31 = vld [vmem:[#allocation6 + $0x8] sm:$0xff]  ;;  %v49_v32 = vld [vmem:[#allocation6] sm:$0xff] }
  0x28   :  { %102 = vmatpush1.msra.mxu0 %v71_v10  ;;  %232 = vmatpush1.msra.mxu1 %v71_v10  ;;  %v47_v33 = vld [vmem:[#allocation3] sm:$0xff]  ;;  %v48_v34 = vld [vmem:[#allocation3 + $0x8] sm:$0xff] }
  0x29   :  { %103 = vmatprep.subr.mxu0 %v70_v11  ;;  %217 = vmatprep.subr.mxu1 %v70_v11  ;;  %v81_v38 = vld [vmem:[%s383_s3] sm:$0x3]  ;;  %s197_s3 = sshll.u32 %s333_s0, 4  ;;  %s198_s3 = int_to_ptr.vmem [resolvable:$true] %s197_s3 }
  0x2a   :  { %104 = vmatpush1.msra.mxu0 %v69_v12  ;;  %233 = vmatpush1.msra.mxu1 %v69_v12  ;;  %v86_v39 = vrot.slane %v81_v38, %v85_v37  ;;  %v90_v54 = vrot.slane %v81_v38, %v89_v53  ;;  %s300_s5 = scalar_lea.vmem %s198_s3, 256  ;;  %p305_p11 = scmp.lt.s32.totalorder %s198_s3, %s198_s3 }
  0x2b   :  { %105 = vmatprep.subr.mxu0 %v68_v13  ;;  %218 = vmatprep.subr.mxu1 %v68_v13  ;;  %p301_p10 = scmp.ne.s32.totalorder %s198_s3, %s300_s5  ;;  %p306_p12 = scmp.lt.s32.totalorder %s300_s5, %s300_s5 }
  0x2c   :  { %106 = vmatpush1.msra.mxu0 %v67_v14  ;;  %234 = vmatpush1.msra.mxu1 %v67_v14 }
  0x2d   :  { %107 = vmatprep.subr.mxu0 %v66_v15  ;;  %219 = vmatprep.subr.mxu1 %v66_v15  ;;  %p307_p13 = por %p306_p12, %p305_p11 }
  0x2e   :  { %108 = vmatpush1.msra.mxu0 %v65_v16  ;;  %235 = vmatpush1.msra.mxu1 %v65_v16 }
  0x2f   :  { %109 = vmatprep.subr.mxu0 %v64_v17  ;;  %220 = vmatprep.subr.mxu1 %v64_v17  ;;  %p308_p0 = pnand %p307_p13, %p301_p10 }
  0x30   :  { %110 = vmatpush1.msra.mxu0 %v63_v18  ;;  %236 = vmatpush1.msra.mxu1 %v63_v18 }
  0x31   :  { %111 = vmatprep.subr.mxu0 %v62_v19  ;;  %221 = vmatprep.subr.mxu1 %v62_v19 }
  0x32   :  { %112 = vmatpush1.msra.mxu0 %v61_v20  ;;  %237 = vmatpush1.msra.mxu1 %v61_v20 }
  0x33   :  { %113 = vmatprep.subr.mxu0 %v60_v21  ;;  %222 = vmatprep.subr.mxu1 %v60_v21 }
  0x34   :  { %114 = vmatpush1.msra.mxu0 %v59_v22  ;;  %238 = vmatpush1.msra.mxu1 %v59_v22 }
  0x35   :  { %115 = vmatprep.subr.mxu0 %v58_v23  ;;  %223 = vmatprep.subr.mxu1 %v58_v23 }
  0x36   :  { %116 = vmatpush1.msra.mxu0 %v57_v24  ;;  %239 = vmatpush1.msra.mxu1 %v57_v24 }
  0x37   :  { %117 = vmatprep.subr.mxu0 %v56_v25  ;;  %224 = vmatprep.subr.mxu1 %v56_v25 }
  0x38   :  { %118 = vmatpush1.msra.mxu0 %v55_v26  ;;  %240 = vmatpush1.msra.mxu1 %v55_v26 }
  0x39   :  { %119 = vmatprep.subr.mxu0 %v54_v27  ;;  %225 = vmatprep.subr.mxu1 %v54_v27 }
  0x3a   :  { %120 = vmatpush1.msra.mxu0 %v53_v28  ;;  %241 = vmatpush1.msra.mxu1 %v53_v28 }
  0x3b   :  { %121 = vmatprep.subr.mxu0 %v52_v29  ;;  %226 = vmatprep.subr.mxu1 %v52_v29 }
  0x3c   :  { %122 = vmatpush1.msra.mxu0 %v51_v30  ;;  %242 = vmatpush1.msra.mxu1 %v51_v30 }
  0x3d   :  { %123 = vmatprep.subr.mxu0 %v50_v31  ;;  %227 = vmatprep.subr.mxu1 %v50_v31 }
  0x3e   :  { %124 = vmatpush1.msra.mxu0 %v49_v32  ;;  %243 = vmatpush1.msra.mxu1 %v49_v32 }
  0x3f   :  { %158 = vmatmul.mubr.f32.vlgmr.msra.gmra.mxu0 %v47_v33  ;;  %164 = vmatmul.mubr.f32.vlgmr.msra.gmra.mxu1 %v48_v34 }
  0xff   :  { %v159_v40 = vpop.f32.mrf.mxu0  ;;  %v165_v42 = vpop.f32.mrf.mxu1 }
 0x100   :  { %v160_v43 = vadd.f32 %v159_v40, %v86_v39  ;;  %v166_v44 = vadd.f32 %v165_v42, %v86_v39 }
 0x101   :  { %v161_v55 = vpop.f32.mrf.mxu0  ;;  %v167_v56 = vpop.f32.mrf.mxu1 }
 0x102   :  { %v172_v45 = vmul.f32 %v171_v41, %v160_v43  ;;  %v173_v46 = vmul.f32 %v171_v41, %v166_v44  ;;  %v162_v60 = vadd.f32 %v161_v55, %v90_v54  ;;  %v168_v62 = vadd.f32 %v167_v56, %v90_v54 }
 0x104   :  { %v210_v47 = vmul.f32 -1.442695, %v172_v45  ;;  %v211_v48 = vmul.f32 -1.442695, %v173_v46 }
 0x106   :  { %252 = vpow2.f32 %v210_v47 }
 0x107   :  { %254 = vpow2.f32 %v211_v48 }
 0x113   :  { %v253_v49 = vpop.eup %252 }
 0x114   :  { %v255_v50 = vpop.eup %254  ;;  %v180_v51 = vadd.f32 1.0, %v253_v49 }
 0x115   :  { %v181_v52 = vadd.f32 1.0, %v255_v50 }
 0x116   :  { %256 = vrcp.f32 %v180_v51 }
 0x117   :  { %258 = vrcp.f32 %v181_v52 }
 0x123   :  { %v257_v57 = vpop.eup %256 }
 0x124   :  { %v259_v58 = vpop.eup %258  ;;  %v186_v59 = vmul.f32 %v257_v57, %v160_v43 }
 0x125   :  { %v187_v61 = vmul.f32 %v259_v58, %v166_v44 }
 0x126   :  { %v188_v63 = vmul.f32 %v186_v59, %v162_v60 }
 0x127   :  { %v189_v0 = vmul.f32 %v187_v61, %v168_v62 }
 0x128   :  { %190 = vst [vmem:[#allocation8] sm:$0xff] %v188_v63 }
 0x129   :  { %191 = vst [vmem:[#allocation8 + $0x8] sm:$0xff] %v189_v0 }
 0x12a   :  { %311 = shalt.err (!%p308_p0)
}
 0x12b   :  { %203 = dma.vmem_to_hbm [thread:$0]  %s198_s3, 256, %s384_s4, [#allocation5], %s327_s18, %s327_s18, %s328_s19  }
 0x12c   :  { %324 = dma.done.wait [#allocation5], 256  }
 0x12d   :  { %325 = vsyncadd [#allocation5], 4294967040 }
 0x12e   :  { %207 = vsyncpa [#allocation4], 1 }
 0x12f   :  { %208 = vsyncpa [#allocation7], 1 }
 0x130   :  { %209 = vsyncpa [#allocation5], 1 }

</bundles_post_ra>
